<compile_context>
chip_gen: v7x
topology: tpu7x:2x2x1
jax: 0.10.0
libtpu: 0.0.40
codegen_flags: <defaults>
</compile_context>

<pallas_src>
import functools

import jax
import jax.numpy as jnp
from jax.experimental import pallas as pl
from jax.experimental.pallas import tpu as pltpu

_LANE = 128


def _round_up(x, m):
    return ((x + m - 1) // m) * m


def _pad2(a, rows, cols):
    return jnp.pad(a, ((0, rows - a.shape[0]), (0, cols - a.shape[1])))


def _dqn_kernel(x_ref, w1_ref, w2_ref, w3_ref, b_ref, o_ref, *, h1p, h2p, np_):
    # Fused 3-layer MLP on one batch tile. MXU accumulates in f32; bias/ReLU in f32.
    x = x_ref[...]
    b1 = b_ref[0:1, :h1p]
    b2 = b_ref[1:2, :h2p]
    b3 = b_ref[2:3, :np_]

    # Layer 1: Linear(n_states -> 16, zero-padded to h1p lanes) + ReLU
    h1 = jnp.dot(x, w1_ref[...], preferred_element_type=jnp.float32) + b1
    h1 = jnp.maximum(h1, 0.0)

    # Layer 2: Linear(16 -> 24, padded) + ReLU
    h2 = jnp.dot(h1.astype(w2_ref.dtype), w2_ref[...],
                 preferred_element_type=jnp.float32) + b2
    h2 = jnp.maximum(h2, 0.0)

    # Final layer: Linear(24 -> n_actions, padded), no activation.
    out = jnp.dot(h2.astype(w3_ref.dtype), w3_ref[...],
                  preferred_element_type=jnp.float32) + b3
    o_ref[...] = out.astype(o_ref.dtype)


def dqn_forward(x, params, *, batch_tile=2048, matmul_in_bf16=False):
    """x: [B, n_states] float32. params: dict of w{1,2,3}:[in,out], b{1,2,3}:[1,out]."""
    w1, b1, w2, b2, w3, b3 = (params["w1"], params["b1"], params["w2"],
                              params["b2"], params["w3"], params["b3"])
    B, n_states = x.shape
    h1, h2 = w1.shape[1], w2.shape[1]
    n_actions = w3.shape[1]

    # Lane-dense padded widths (multiples of 128).
    h1p = _round_up(h1, _LANE)
    h2p = _round_up(h2, _LANE)
    np_ = _round_up(n_actions, _LANE)
    wmax = max(h1p, h2p, np_)

    w1p = _pad2(w1, n_states, h1p)
    w2p = _pad2(w2, h1p, h2p)
    w3p = _pad2(w3, h2p, np_)
    biases = jnp.concatenate(
        [_pad2(b1, 1, wmax), _pad2(b2, 1, wmax), _pad2(b3, 1, wmax)], axis=0)

    if matmul_in_bf16:
        # Halves input-DMA bytes for HBM-bound large batches (v6e/v7x). Accumulation
        # stays f32 via preferred_element_type; bias/ReLU stay f32 (v5e-friendly).
        x = x.astype(jnp.bfloat16)
        w1p = w1p.astype(jnp.bfloat16)
        w2p = w2p.astype(jnp.bfloat16)
        w3p = w3p.astype(jnp.bfloat16)

    # Batch tiling: pad B up to a multiple of the tile so every block is full.
    tb = min(_round_up(batch_tile, 8), _round_up(B, 8))
    b_pad = _round_up(B, tb)
    if b_pad != B:
        x = jnp.pad(x, ((0, b_pad - B), (0, 0)))
    grid = (b_pad // tb,)

    kernel = functools.partial(_dqn_kernel, h1p=h1p, h2p=h2p, np_=np_)

    flops = 2 * b_pad * (n_states * h1p + h1p * h2p + h2p * np_)
    bytes_accessed = (x.size * x.dtype.itemsize
                      + w1p.size * w1p.dtype.itemsize
                      + w2p.size * w2p.dtype.itemsize
                      + w3p.size * w3p.dtype.itemsize
                      + biases.size * biases.dtype.itemsize
                      + b_pad * np_ * 4)

    out = pl.pallas_call(
        kernel,
        out_shape=jax.ShapeDtypeStruct((b_pad, np_), jnp.float32),
        grid=grid,
        in_specs=[
            pl.BlockSpec((tb, n_states), lambda i: (i, 0)),   # x: tiled over batch
            pl.BlockSpec((n_states, h1p), lambda i: (0, 0)),  # weights: VMEM-resident
            pl.BlockSpec((h1p, h2p), lambda i: (0, 0)),
            pl.BlockSpec((h2p, np_), lambda i: (0, 0)),
            pl.BlockSpec((3, wmax), lambda i: (0, 0)),        # packed biases
        ],
        out_specs=pl.BlockSpec((tb, np_), lambda i: (i, 0)),
        compiler_params=pltpu.CompilerParams(
            dimension_semantics=("parallel",),        # shard batch across TCs (v7x)
            vmem_limit_bytes=32 * 1024 * 1024,        # explicit; safe on v5e/v6e/v7x
        ),
        cost_estimate=pl.CostEstimate(
            flops=flops, transcendentals=0, bytes_accessed=bytes_accessed),
    )(x, w1p, w2p, w3p, biases)

    # TODO(synk): for per-env-step inference (B~8), fuse argmax / TD-loss downstream
    # work into this kernel to amortize launch+DMA setup; left as a wrapper-level op.
    return out[:B, :n_actions]


def init_params(key, n_states, n_actions):
    """Deterministic init matching the shapes from _DQN.__init__ (stored transposed)."""
    k1, k2, k3, k4, k5, k6 = jax.random.split(key, 6)

    def lin_init(kw, kb, fan_in, fan_out):
        # Mimic torch.nn.Linear default init (uniform +/- 1/sqrt(fan_in)).
        bound = 1.0 / jnp.sqrt(jnp.float32(fan_in))
        w = jax.random.uniform(kw, (fan_in, fan_out), jnp.float32, -bound, bound)
        b = jax.random.uniform(kb, (1, fan_out), jnp.float32, -bound, bound)
        return w, b

    w1, b1 = lin_init(k1, k2, n_states, 16)
    w2, b2 = lin_init(k3, k4, 16, 24)
    w3, b3 = lin_init(k5, k6, 24, n_actions)
    return {"w1": w1, "b1": b1, "w2": w2, "b2": b2, "w3": w3, "b3": b3}


def dqn_reference(x, params):
    """Pure-JAX reference for correctness checking."""
    h1 = jnp.maximum(x @ params["w1"] + params["b1"], 0.0)
    h2 = jnp.maximum(h1 @ params["w2"] + params["b2"], 0.0)
    return h2 @ params["w3"] + params["b3"]


if __name__ == "__main__":
    key = jax.random.PRNGKey(0)
    k_param, k_x, k_x2 = jax.random.split(key, 3)

    n_states, n_actions, batch = 4, 2, 8
    params = init_params(k_param, n_states, n_actions)

    # Case 1: small batch, single grid step (the common DQN inference case).
    x = jax.random.normal(k_x, (batch, n_states), dtype=jnp.float32)
    out = jax.block_until_ready(dqn_forward(x, params))
    ref = dqn_reference(x, params)
    assert out.shape == (batch, n_actions)
    assert jnp.allclose(out, ref, atol=1e-5, rtol=1e-5), "mismatch vs reference (small)"

    # Case 2: multi-tile grid with batch padding (exercises pipelining + edge padding).
    x2 = jax.random.normal(k_x2, (300, n_states), dtype=jnp.float32)
    out2 = jax.block_until_ready(dqn_forward(x2, params, batch_tile=64))
    ref2 = dqn_reference(x2, params)
    assert out2.shape == (300, n_actions)
    assert jnp.allclose(out2, ref2, atol=1e-5, rtol=1e-5), "mismatch vs reference (tiled)"

    print("KERNEL_OK")
</pallas_src>

<mosaic_0001>
module attributes {stable_mosaic.version = 11 : i64} {
  func.func @_dqn_kernel(%arg0: i32, %arg1: memref<8x4xf32, #tpu.memory_space<vmem>>, %arg2: memref<4x128xf32, #tpu.memory_space<vmem>>, %arg3: memref<128x128xf32, #tpu.memory_space<vmem>>, %arg4: memref<128x128xf32, #tpu.memory_space<vmem>>, %arg5: memref<3x128xf32, #tpu.memory_space<vmem>>, %arg6: memref<8x128xf32, #tpu.memory_space<vmem>>) attributes {dimension_semantics = [#tpu.dimension_semantics<parallel>], iteration_bounds = array<i64: 1>, scalar_prefetch = 0 : i64, scratch_operands = 0 : i64, tpu.core_type = #tpu.core_type<tc>, window_params = [{transform_indices = @transform_0, window_bounds = array<i64: 8, 4>}, {pipeline_mode = #tpu.pipeline_mode<synchronous>, transform_indices = @transform_1, window_bounds = array<i64: 4, 128>}, {pipeline_mode = #tpu.pipeline_mode<synchronous>, transform_indices = @transform_2, window_bounds = array<i64: 128, 128>}, {pipeline_mode = #tpu.pipeline_mode<synchronous>, transform_indices = @transform_3, window_bounds = array<i64: 128, 128>}, {pipeline_mode = #tpu.pipeline_mode<synchronous>, transform_indices = @transform_4, window_bounds = array<i64: 3, 128>}, {transform_indices = @transform_5, window_bounds = array<i64: 8, 128>}]} {
    %c0 = arith.constant 0 : index
    %c0_0 = arith.constant 0 : index
    %0 = vector.load %arg1[%c0, %c0_0] : memref<8x4xf32, #tpu.memory_space<vmem>>, vector<8x4xf32>
    %c0_1 = arith.constant 0 : index
    %c0_2 = arith.constant 0 : index
    %1 = vector.load %arg5[%c0_1, %c0_2] : memref<3x128xf32, #tpu.memory_space<vmem>>, vector<1x128xf32>
    %c1 = arith.constant 1 : index
    %c0_3 = arith.constant 0 : index
    %2 = vector.load %arg5[%c1, %c0_3] : memref<3x128xf32, #tpu.memory_space<vmem>>, vector<1x128xf32>
    %c2 = arith.constant 2 : index
    %c0_4 = arith.constant 0 : index
    %3 = vector.load %arg5[%c2, %c0_4] : memref<3x128xf32, #tpu.memory_space<vmem>>, vector<1x128xf32>
    %c0_5 = arith.constant 0 : index
    %c0_6 = arith.constant 0 : index
    %4 = vector.load %arg2[%c0_5, %c0_6] : memref<4x128xf32, #tpu.memory_space<vmem>>, vector<4x128xf32>
    %cst = arith.constant dense<0.000000e+00> : vector<8x128xf32>
    %5 = tpu.matmul %0, %4, %cst {dimension_numbers = #tpu.dot_dimension_numbers<[1], [0], [0], [1], [0, 0, 1, 1], [], []>} : vector<8x4xf32>, vector<4x128xf32>, vector<8x128xf32> -> vector<8x128xf32>
    %6 = vector.broadcast %1 : vector<1x128xf32> to vector<8x128xf32>
    %7 = arith.addf %5, %6 : vector<8x128xf32>
    %cst_7 = arith.constant 0.000000e+00 : f32
    %8 = vector.broadcast %cst_7 : f32 to vector<8x128xf32>
    %9 = arith.maximumf %7, %8 : vector<8x128xf32>
    %c0_8 = arith.constant 0 : index
    %c0_9 = arith.constant 0 : index
    %10 = vector.load %arg3[%c0_8, %c0_9] : memref<128x128xf32, #tpu.memory_space<vmem>>, vector<128x128xf32>
    %cst_10 = arith.constant dense<0.000000e+00> : vector<8x128xf32>
    %11 = tpu.matmul %9, %10, %cst_10 {dimension_numbers = #tpu.dot_dimension_numbers<[1], [0], [0], [1], [0, 0, 1, 1], [], []>} : vector<8x128xf32>, vector<128x128xf32>, vector<8x128xf32> -> vector<8x128xf32>
    %12 = vector.broadcast %2 : vector<1x128xf32> to vector<8x128xf32>
    %13 = arith.addf %11, %12 : vector<8x128xf32>
    %cst_11 = arith.constant 0.000000e+00 : f32
    %14 = vector.broadcast %cst_11 : f32 to vector<8x128xf32>
    %15 = arith.maximumf %13, %14 : vector<8x128xf32>
    %c0_12 = arith.constant 0 : index
    %c0_13 = arith.constant 0 : index
    %16 = vector.load %arg4[%c0_12, %c0_13] : memref<128x128xf32, #tpu.memory_space<vmem>>, vector<128x128xf32>
    %cst_14 = arith.constant dense<0.000000e+00> : vector<8x128xf32>
    %17 = tpu.matmul %15, %16, %cst_14 {dimension_numbers = #tpu.dot_dimension_numbers<[1], [0], [0], [1], [0, 0, 1, 1], [], []>} : vector<8x128xf32>, vector<128x128xf32>, vector<8x128xf32> -> vector<8x128xf32>
    %18 = vector.broadcast %3 : vector<1x128xf32> to vector<8x128xf32>
    %19 = arith.addf %17, %18 : vector<8x128xf32>
    %c0_15 = arith.constant 0 : index
    %c0_16 = arith.constant 0 : index
    %20 = vector.load %arg6[%c0_15, %c0_16] : memref<8x128xf32, #tpu.memory_space<vmem>>, vector<8x128xf32>
    tpu.vector_store %arg6[%c0_15, %c0_16], %19 {strides = array<i32>} : memref<8x128xf32, #tpu.memory_space<vmem>>, vector<8x128xf32>,
    return
  }
  func.func @transform_0(%arg0: i32) -> (i32, i32) {
    %c0_i32 = arith.constant 0 : i32
    %c0_i32_0 = arith.constant 0 : i32
    return %arg0, %c0_i32 : i32, i32
  }
  func.func @transform_1(%arg0: i32) -> (i32, i32) {
    %c0_i32 = arith.constant 0 : i32
    %c0_i32_0 = arith.constant 0 : i32
    %c0_i32_1 = arith.constant 0 : i32
    return %c0_i32, %c0_i32_0 : i32, i32
  }
  func.func @transform_2(%arg0: i32) -> (i32, i32) {
    %c0_i32 = arith.constant 0 : i32
    %c0_i32_0 = arith.constant 0 : i32
    %c0_i32_1 = arith.constant 0 : i32
    return %c0_i32, %c0_i32_0 : i32, i32
  }
  func.func @transform_3(%arg0: i32) -> (i32, i32) {
    %c0_i32 = arith.constant 0 : i32
    %c0_i32_0 = arith.constant 0 : i32
    %c0_i32_1 = arith.constant 0 : i32
    return %c0_i32, %c0_i32_0 : i32, i32
  }
  func.func @transform_4(%arg0: i32) -> (i32, i32) {
    %c0_i32 = arith.constant 0 : i32
    %c0_i32_0 = arith.constant 0 : i32
    %c0_i32_1 = arith.constant 0 : i32
    return %c0_i32, %c0_i32_0 : i32, i32
  }
  func.func @transform_5(%arg0: i32) -> (i32, i32) {
    %c0_i32 = arith.constant 0 : i32
    %c0_i32_0 = arith.constant 0 : i32
    return %arg0, %c0_i32 : i32, i32
  }
}

</mosaic_0001>

<bundles_post_ra>
// kernel: tpu_custom_call.1
= control target key start
LH: loop header
LB: loop body
LE: loop exit
PB: predicated region body
PF: predicated region fallthrough
CT: control target
= control target key end

     0   :  { %10 = vsyncpa [#allocation3], 0  ;;  %s687_s0 = inlined_call_operand.vmem [shape: f32[8,4], index: 0, kind: input, shape index: {}]   ;;  %s688_s1 = inlined_call_operand.vmem [shape: f32[4,128], index: 1, kind: input, shape index: {}]   ;;  %s689_s2 = inlined_call_operand.hbm [shape: f32[128,128], index: 2, kind: input, shape index: {}]   ;;  %s690_s3 = inlined_call_operand.hbm [shape: f32[128,128], index: 3, kind: input, shape index: {}]   ;;  %s691_s4 = inlined_call_operand.vmem [shape: f32[3,128], index: 4, kind: input, shape index: {}]   ;;  %s692_s5 = inlined_call_operand.hbm [shape: f32[8,128], index: 5, kind: output, shape index: {}]  }
   0x1   :  { %11 = vsyncpa [#allocation6], 0 }
   0x2   :  { %12 = vsyncpa [#allocation4], 0  ;;  %s579_s18 = smov [#allocation2]   ;;  %s507_s22 = scalar_lea.hbm %s689_s2, 2048 }
   0x3   :  { %s22_s19 = sshll.u32 %s579_s18, 4  ;;  %p508_p0 = scmp.ne.s32.totalorder %s689_s2, %s507_s22  ;;  %s23_s19 = int_to_ptr.vmem [resolvable:$true] %s22_s19 }
   0x4   :  { %p511_p1 = scmp.lt.u32.totalorder %s507_s22, %s689_s2 }
   0x6   :  { %p513_p2 = pnand %p511_p1, %p508_p0 }
   0x8   :  { %516 = shalt.err (!%p513_p2)
}
   0x9   :  { %s517_s27 = scalar_lea.vmem %s23_s19, 2048  ;;  %p522_p4 = scmp.lt.s32.totalorder %s23_s19, %s23_s19 }
   0xa   :  { %p518_p3 = scmp.ne.s32.totalorder %s23_s19, %s517_s27  ;;  %p523_p5 = scmp.lt.s32.totalorder %s517_s27, %s517_s27 }
   0xc   :  { %p524_p6 = por %p523_p5, %p522_p4 }
   0xe   :  { %p525_p7 = pnand %p524_p6, %p518_p3 }
  0x10   :  { %528 = shalt.err (!%p525_p7)
}
  0x11   :  { %s580_s28 = smov 128   ;;  %s581_s29 = smov 8  }
  0x12   :  { %28 = dma.hbm_to_vmem [thread:$0]  %s689_s2, 2048, %s23_s19, [#allocation3], %s580_s28, %s580_s28, %s581_s29  }
  0x13   :  { %s582_s7 = smov [#allocation5]   ;;  %s529_s11 = scalar_lea.hbm %s690_s3, 2048 }
  0x14   :  { %s34_s8 = sshll.u32 %s582_s7, 4  ;;  %p530_p8 = scmp.ne.s32.totalorder %s690_s3, %s529_s11  ;;  %s35_s8 = int_to_ptr.vmem [resolvable:$true] %s34_s8 }
  0x15   :  { %p533_p9 = scmp.lt.u32.totalorder %s529_s11, %s690_s3 }
  0x17   :  { %p535_p10 = pnand %p533_p9, %p530_p8 }
  0x19   :  { %538 = shalt.err (!%p535_p10)
}
  0x1a   :  { %s539_s16 = scalar_lea.vmem %s35_s8, 2048  ;;  %p544_p12 = scmp.lt.s32.totalorder %s35_s8, %s35_s8 }
  0x1b   :  { %p540_p11 = scmp.ne.s32.totalorder %s35_s8, %s539_s16  ;;  %p545_p13 = scmp.lt.s32.totalorder %s539_s16, %s539_s16 }
  0x1d   :  { %p546_p0 = por %p545_p13, %p544_p12 }
  0x1f   :  { %p547_p1 = pnand %p546_p0, %p540_p11 }
  0x21   :  { %550 = shalt.err (!%p547_p1)
}
  0x22   :  { %40 = dma.hbm_to_vmem [thread:$0]  %s690_s3, 2048, %s35_s8, [#allocation6], %s580_s28, %s580_s28, %s581_s29  }
  0x23   :  { %573 = dma.done.wait [#allocation3], 2048  }
  0x24   :  { %574 = vsyncadd [#allocation3], 4294965248 }
  0x25   :  { %575 = dma.done.wait [#allocation6], 2048  }
  0x26   :  { %576 = vsyncadd [#allocation6], 4294965248  ;;  %v583_v0 = vmov 0.0   ;;  %vm584_vm0 = vmmov 0   ;;  %v585_v1 = vmov 0.0|0.0   ;;  %vm62_vm1 = vcmask 1043456  }
  0x27   :  { %376 = vmatprep.subr.mxu0 %v583_v0  ;;  %378 = vmatprep.mubr.msk.f32.mxu0 %vm584_vm0, %v583_v0  ;;  %vm58_vm2 = vcmask 31744   ;;  %v53_v2 = vld [vmem:[%s688_s1] sm:$0xf]  ;;  %v138_v5 = vld [vmem:[#allocation2 + $0x8] sm:$0xff]  ;;  %v139_v6 = vld [vmem:[#allocation2 + $0x10] sm:$0xff]  ;;  %s586_s25 = smov [#allocation7]  }
  0x28   :  { %451 = vmatprep.subr.bf16.mxu1 %v585_v1  ;;  %413 = vmatprep.mubr.msk.f32.mxu1 %vm584_vm0, %v583_v0  ;;  %v49_v3 = vld [vmem:[%s687_s0] sm:$0xff]  ;;  %v140_v7 = vld [vmem:[#allocation2 + $0x18] sm:$0xff]  ;;  %v142_v11 = vld [vmem:[#allocation2 + $0x28] sm:$0xff]  ;;  %s325_s26 = sshll.u32 %s586_s25, 4  ;;  %s326_s26 = int_to_ptr.vmem [resolvable:$true] %s325_s26 }
  0x29   :  { %v137_v4 = vld [vmem:[#allocation2] sm:$0xff]  ;;  %377 = vmatpush3.msk.msra.mxu0 %vm62_vm1, %v53_v2  ;;  %v455_v9 = vpack.c.bf16 %v140_v7, %v139_v6  ;;  %v143_v13 = vld [vmem:[#allocation2 + $0x30] sm:$0xff]  ;;  %v144_v14 = vld [vmem:[#allocation2 + $0x38] sm:$0xff]  ;;  %s551_s27 = scalar_lea.vmem %s326_s26, 128  ;;  %p556_p3 = scmp.lt.s32.totalorder %s326_s26, %s326_s26 }
  0x2a   :  { %379 = vmatmul.mubr.msk.f32.vlgmr.msra.gmra.mrb[0].mxu0 %vm58_vm2, %v49_v3  ;;  %v452_v8 = vpack.c.bf16 %v138_v5, %v137_v4  ;;  %475 = vmatprep.subr.bf16.mxu0 %v585_v1  ;;  %v141_v10 = vld [vmem:[#allocation2 + $0x20] sm:$0xff]  ;;  %v461_v15 = vpack.c.bf16 %v144_v14, %v143_v13  ;;  %v146_v17 = vld [vmem:[#allocation2 + $0x48] sm:$0xff]  ;;  %v147_v19 = vld [vmem:[#allocation2 + $0x50] sm:$0xff]  ;;  %p552_p2 = scmp.ne.s32.totalorder %s326_s26, %s551_s27  ;;  %p557_p4 = scmp.lt.s32.totalorder %s551_s27, %s551_s27 }
  0x2b   :  { %448 = vmatprep.mubr.msk.f32.mxu0 %vm584_vm0, %v583_v0  ;;  %v458_v12 = vpack.c.bf16 %v142_v11, %v141_v10  ;;  %v145_v16 = vld [vmem:[#allocation2 + $0x40] sm:$0xff]  ;;  %v148_v20 = vld [vmem:[#allocation2 + $0x58] sm:$0xff]  ;;  %v150_v23 = vld [vmem:[#allocation2 + $0x68] sm:$0xff] }
  0x2c   :  { %453 = vmatpush3.bf16.msra.mxu1 %v452_v8  ;;  %v464_v18 = vpack.c.bf16 %v146_v17, %v145_v16  ;;  %v467_v21 = vpack.c.bf16 %v148_v20, %v147_v19  ;;  %v149_v22 = vld [vmem:[#allocation2 + $0x60] sm:$0xff]  ;;  %v151_v25 = vld [vmem:[#allocation2 + $0x70] sm:$0xff]  ;;  %v152_v26 = vld [vmem:[#allocation2 + $0x78] sm:$0xff]  ;;  %p558_p5 = por %p557_p4, %p556_p3 }
  0x2d   :  { %454 = vmatprep.subr.bf16.mxu1 %v585_v1  ;;  %v470_v24 = vpack.c.bf16 %v150_v23, %v149_v22  ;;  %v473_v27 = vpack.c.bf16 %v152_v26, %v151_v25  ;;  %v228_v28 = vld [vmem:[#allocation5] sm:$0xff]  ;;  %v229_v29 = vld [vmem:[#allocation5 + $0x8] sm:$0xff]  ;;  %v230_v30 = vld [vmem:[#allocation5 + $0x10] sm:$0xff] }
  0x2e   :  { %v476_v31 = vpack.c.bf16 %v229_v29, %v228_v28  ;;  %v231_v32 = vld [vmem:[#allocation5 + $0x18] sm:$0xff]  ;;  %v232_v34 = vld [vmem:[#allocation5 + $0x20] sm:$0xff]  ;;  %v233_v35 = vld [vmem:[#allocation5 + $0x28] sm:$0xff]  ;;  %p559_p6 = pnand %p558_p5, %p552_p2 }
  0x2f   :  { %v479_v33 = vpack.c.bf16 %v231_v32, %v230_v30  ;;  %v482_v36 = vpack.c.bf16 %v233_v35, %v232_v34  ;;  %v234_v37 = vld [vmem:[#allocation5 + $0x30] sm:$0xff]  ;;  %v235_v38 = vld [vmem:[#allocation5 + $0x38] sm:$0xff]  ;;  %v236_v40 = vld [vmem:[#allocation5 + $0x40] sm:$0xff] }
  0x30   :  { %456 = vmatpush3.bf16.msra.mxu1 %v455_v9  ;;  %477 = vmatpush3.bf16.msra.mxu0 %v476_v31  ;;  %v485_v39 = vpack.c.bf16 %v235_v38, %v234_v37  ;;  %v237_v41 = vld [vmem:[#allocation5 + $0x48] sm:$0xff]  ;;  %v238_v43 = vld [vmem:[#allocation5 + $0x50] sm:$0xff]  ;;  %v239_v44 = vld [vmem:[#allocation5 + $0x58] sm:$0xff] }
  0x31   :  { %457 = vmatprep.subr.bf16.mxu1 %v585_v1  ;;  %478 = vmatprep.subr.bf16.mxu0 %v585_v1  ;;  %v488_v42 = vpack.c.bf16 %v237_v41, %v236_v40  ;;  %v491_v45 = vpack.c.bf16 %v239_v44, %v238_v43  ;;  %v240_v46 = vld [vmem:[#allocation5 + $0x60] sm:$0xff]  ;;  %v241_v47 = vld [vmem:[#allocation5 + $0x68] sm:$0xff]  ;;  %v242_v54 = vld [vmem:[#allocation5 + $0x70] sm:$0xff] }
  0x32   :  { %v494_v48 = vpack.c.bf16 %v241_v47, %v240_v46  ;;  %v335_v49 = vld [vmem:[%s691_s4] ss:$0 sm:$0xff]  ;;  %v243_v55 = vld [vmem:[#allocation5 + $0x78] sm:$0xff]  ;;  %v338_v57 = vld [vmem:[%s691_s4 + $0x1] ss:$0 sm:$0xff] }
  0x33   :  { %v497_v56 = vpack.c.bf16 %v243_v55, %v242_v54  ;;  %v339_v62 = vld [vmem:[%s691_s4 + $0x2] ss:$0 sm:$0xff] }
  0x34   :  { %459 = vmatpush3.bf16.msra.mxu1 %v458_v12  ;;  %480 = vmatpush3.bf16.msra.mxu0 %v479_v33 }
  0x35   :  { %460 = vmatprep.subr.bf16.mxu1 %v585_v1  ;;  %481 = vmatprep.subr.bf16.mxu0 %v585_v1 }
  0x38   :  { %462 = vmatpush3.bf16.msra.mxu1 %v461_v15  ;;  %483 = vmatpush3.bf16.msra.mxu0 %v482_v36 }
  0x39   :  { %463 = vmatprep.subr.bf16.mxu1 %v585_v1  ;;  %484 = vmatprep.subr.bf16.mxu0 %v585_v1 }
  0x3c   :  { %465 = vmatpush3.bf16.msra.mxu1 %v464_v18  ;;  %486 = vmatpush3.bf16.msra.mxu0 %v485_v39 }
  0x3d   :  { %466 = vmatprep.subr.bf16.mxu1 %v585_v1  ;;  %487 = vmatprep.subr.bf16.mxu0 %v585_v1 }
  0x40   :  { %468 = vmatpush3.bf16.msra.mxu1 %v467_v21  ;;  %489 = vmatpush3.bf16.msra.mxu0 %v488_v42 }
  0x41   :  { %469 = vmatprep.subr.bf16.mxu1 %v585_v1  ;;  %490 = vmatprep.subr.bf16.mxu0 %v585_v1 }
  0x44   :  { %471 = vmatpush3.bf16.msra.mxu1 %v470_v24  ;;  %492 = vmatpush3.bf16.msra.mxu0 %v491_v45 }
  0x45   :  { %472 = vmatprep.subr.bf16.mxu1 %v585_v1  ;;  %493 = vmatprep.subr.bf16.mxu0 %v585_v1 }
  0x48   :  { %474 = vmatpush3.bf16.msra.mxu1 %v473_v27  ;;  %495 = vmatpush3.bf16.msra.mxu0 %v494_v48 }
  0x49   :  { %496 = vmatprep.subr.bf16.mxu0 %v585_v1 }
  0x4c   :  { %498 = vmatpush3.bf16.msra.mxu0 %v497_v56 }
  0xfd   :  { %v132_v50 = vpop.f32.mrb[0].mxu0 }
  0xfe   :  { %v133_v51 = vadd.f32 %v335_v49, %v132_v50  ;;  %v380_v52 = vpop.f32.mrb[1].mxu0 }
 0x100   :  { %v136_v53 = vmax.f32 %v133_v51, 0.0 }
 0x102   :  { %414 = vmatmul.mubr.f32.vlgmr.msra.gmra.mrb[0].mxu1 %v136_v53 }
 0x1d5   :  { %v223_v58 = vpop.f32.mrb[0].mxu1 }
 0x1d6   :  { %v224_v59 = vadd.f32 %v338_v57, %v223_v58  ;;  %v415_v60 = vpop.f32.mrb[1].mxu1 }
 0x1d8   :  { %v227_v61 = vmax.f32 %v224_v59, 0.0 }
 0x1da   :  { %449 = vmatmul.mubr.f32.vlgmr.msra.gmra.mrb[2].mxu0 %v227_v61 }
 0x2ad   :  { %v314_v63 = vpop.f32.mrb[2].mxu0 }
 0x2ae   :  { %v315_v0 = vadd.f32 %v339_v62, %v314_v63  ;;  %v450_v1 = vpop.f32.mrb[3].mxu0 }
 0x2b0   :  { %318 = vst [vmem:[#allocation7] sm:$0xff] %v315_v0 }
 0x2b1   :  { %562 = shalt.err (!%p559_p6)
}
 0x2b2   :  { %s563_s30 = scalar_lea.hbm %s692_s5, 128 }
 0x2b3   :  { %p564_p7 = scmp.ne.s32.totalorder %s692_s5, %s563_s30  ;;  %p567_p8 = scmp.lt.u32.totalorder %s563_s30, %s692_s5 }
 0x2b5   :  { %p569_p9 = pnand %p567_p8, %p564_p7 }
 0x2b7   :  { %572 = shalt.err (!%p569_p9)
}
 0x2b8   :  { %328 = dma.vmem_to_hbm [thread:$0]  %s326_s26, 128, %s692_s5, [#allocation4]  }
 0x2b9   :  { %577 = dma.done.wait [#allocation4], 128  }
 0x2ba   :  { %578 = vsyncadd [#allocation4], 4294967168 }
 0x2bb   :  { %332 = vsyncpa [#allocation3], 1 }
 0x2bc   :  { %333 = vsyncpa [#allocation6], 1 }
 0x2bd   :  { %334 = vsyncpa [#allocation4], 1 }

</bundles_post_ra>
